<compile_context>
chip_gen: v6e
topology: v6e:2x2x1
jax: 0.10.0
libtpu: 0.0.40
codegen_flags: <defaults>
</compile_context>

<pallas_src>
import jax
import jax.numpy as jnp
from jax import lax
from jax.experimental import pallas as pl
from jax.experimental.pallas import tpu as pltpu


def _make_tv_kernel(h, w):
    """Kernel over a (1, T, H*W) tile emitting per-block partial sums (1,1,2)."""
    n = h * w

    def kernel(x_ref, wmask_ref, out_ref):
        x = x_ref[0]                                   # (T, N), native dtype

        # --- horizontal (W-axis) diffs: neighbor at j-1 via lane rotation ---
        if w > 1:
            xm1 = pltpu.roll(x, shift=1, axis=1)       # xm1[j] = x[j-1] (wrap masked)
            dw = (x - xm1).astype(jnp.float32)         # subtract in native dtype
            w_part = jnp.sum(dw * dw * wmask_ref[...]) # (T,N)*(1,N) broadcast
        else:
            w_part = jnp.float32(0.0)

        # --- vertical (H-axis) diffs: neighbor at j-W via lane rotation ---
        if h > 1:
            xmw = pltpu.roll(x, shift=w, axis=1)       # xmw[j] = x[j-w] (wrap masked)
            dh = (x - xmw).astype(jnp.float32)
            col = lax.broadcasted_iota(jnp.int32, (1, n), 1)
            h_part = jnp.sum(jnp.where(col >= w, dh * dh, 0.0))
        else:
            h_part = jnp.float32(0.0)

        # Single combined output block: lane 0 = h partial, lane 1 = w partial.
        lane = lax.broadcasted_iota(jnp.int32, (1, 1, 2), 2)
        out_ref[...] = jnp.where(lane == 0, h_part, w_part).astype(jnp.float32)

    return kernel


def _largest_divisor_leq(m, cap):
    """Largest divisor of m that is <= cap (>= 1)."""
    cap = max(1, min(cap, m))
    best = 1
    d = 1
    while d * d <= m:
        if m % d == 0:
            if d <= cap and d > best:
                best = d
            q = m // d
            if q <= cap and q > best:
                best = q
        d += 1
    return best


def l_tv(x, tv_loss_weight=1.0):
    """Total-variation loss matching PyTorch L_TV.forward.

    x: (B, C, H, W) array (any float dtype); returns a scalar float32.
    """
    b, c, h, w = x.shape
    count_h = (h - 1) * w
    count_w = h * (w - 1)
    bc = b * c
    n = h * w
    itemsize = int(jnp.dtype(x.dtype).itemsize)

    # --- dtype-aware tile sizing; t divides bc exactly (no pad, no row mask) ---
    elems_from_input = (2 * 1024 * 1024) // max(itemsize, 1)   # ~2 MiB input/step
    elems_from_f32 = (4 * 1024 * 1024) // 4                    # cap f32 working set
    tile_elems = min(elems_from_input, elems_from_f32)
    t_cap = max(1, tile_elems // n)
    # TODO(synk): a single (H, W) slice larger than the tile budget is not
    # sub-tiled along H (needs a 1-row halo); very large images may exceed VMEM.

    if bc % 2 == 0 and bc >= 4:
        # Keep the grid even: pipelining depth >= 2 and both v7x TCs get work.
        t = _largest_divisor_leq(bc // 2, t_cap)
    else:
        t = _largest_divisor_leq(bc, t_cap)
    g = bc // t

    x_tiled = x.reshape(g, t, n)   # contiguous, metadata-only reshape (no HBM copy)

    # Hoisted row-wrap keep mask for horizontal diffs; fetched once (constant
    # block index across the grid -> stays resident in VMEM).
    col = jnp.arange(n, dtype=jnp.int32)
    wmask = ((col % w) != 0).astype(jnp.float32).reshape(1, n)

    cost = pl.CostEstimate(
        flops=int(8 * bc * n),
        transcendentals=0,
        bytes_accessed=int(bc * n * itemsize + n * 4 + g * 2 * 4),
    )

    parts = pl.pallas_call(
        _make_tv_kernel(h, w),
        out_shape=jax.ShapeDtypeStruct((g, 1, 2), jnp.float32),
        grid_spec=pltpu.PrefetchScalarGridSpec(
            num_scalar_prefetch=0,
            grid=(g,),
            in_specs=[
                pl.BlockSpec((1, t, n), lambda i: (i, 0, 0)),
                pl.BlockSpec((1, n), lambda i: (0, 0)),
            ],
            out_specs=pl.BlockSpec((1, 1, 2), lambda i: (i, 0, 0)),
        ),
        compiler_params=pltpu.CompilerParams(
            dimension_semantics=("parallel",),     # disjoint partial sums per block
            vmem_limit_bytes=32 * 1024 * 1024,     # v7x-safe
        ),
        cost_estimate=cost,
    )(x_tiled, wmask)

    h_tv = jnp.sum(parts[:, :, 0])
    w_tv = jnp.sum(parts[:, :, 1])
    out = tv_loss_weight * 2.0 * (h_tv / count_h + w_tv / count_w) / b
    return out.astype(jnp.float32)


def _reference(x, tv_loss_weight=1.0):
    """Pure-JAX reference mirroring the PyTorch forward."""
    b, _, h, w = x.shape
    count_h = (h - 1) * w
    count_w = h * (w - 1)
    xf = x.astype(jnp.float32)
    h_tv = jnp.sum((xf[:, :, 1:, :] - xf[:, :, :-1, :]) ** 2)
    w_tv = jnp.sum((xf[:, :, :, 1:] - xf[:, :, :, :-1]) ** 2)
    return tv_loss_weight * 2.0 * (h_tv / count_h + w_tv / count_w) / b


if __name__ == "__main__":
    key = jax.random.PRNGKey(0)
    x = jax.random.normal(key, (2, 4, 16, 16), dtype=jnp.float32)

    out = l_tv(x, tv_loss_weight=1.0)
    out = jax.block_until_ready(out)

    ref = _reference(x, tv_loss_weight=1.0)
    assert jnp.allclose(out, ref, rtol=1e-5, atol=1e-5), (out, ref)

    print("KERNEL_OK")
</pallas_src>

<mosaic_0001>
module attributes {stable_mosaic.version = 11 : i64} {
  func.func @kernel(%arg0: i32, %arg1: memref<1x4x256xf32, #tpu.memory_space<vmem>>, %arg2: memref<1x256xf32, #tpu.memory_space<vmem>>, %arg3: memref<1x1x2xf32, #tpu.memory_space<vmem>>) attributes {dimension_semantics = [#tpu.dimension_semantics<parallel>], iteration_bounds = array<i64: 2>, scalar_prefetch = 0 : i64, scratch_operands = 0 : i64, tpu.core_type = #tpu.core_type<tc>, window_params = [{transform_indices = @transform_0, window_bounds = array<i64: 1, 4, 256>}, {pipeline_mode = #tpu.pipeline_mode<synchronous>, transform_indices = @transform_1, window_bounds = array<i64: 1, 256>}, {transform_indices = @transform_2, window_bounds = array<i64: 1, 1, 2>}]} {
    %c0 = arith.constant 0 : index
    %c0_0 = arith.constant 0 : index
    %c0_1 = arith.constant 0 : index
    %0 = vector.load %arg1[%c0, %c0_0, %c0_1] : memref<1x4x256xf32, #tpu.memory_space<vmem>>, vector<1x4x256xf32>
    %1 = vector.shape_cast %0 : vector<1x4x256xf32> to vector<4x256xf32>
    %c1_i32 = arith.constant 1 : i32
    %2 = tpu.dynamic_rotate %1 by %c1_i32 dim 1 : vector<4x256xf32>, i32 -> vector<4x256xf32>
    %3 = arith.subf %1, %2 : vector<4x256xf32>
    %4 = arith.mulf %3, %3 : vector<4x256xf32>
    %c0_2 = arith.constant 0 : index
    %c0_3 = arith.constant 0 : index
    %5 = vector.load %arg2[%c0_2, %c0_3] : memref<1x256xf32, #tpu.memory_space<vmem>>, vector<1x256xf32>
    %6 = vector.broadcast %5 : vector<1x256xf32> to vector<4x256xf32>
    %7 = arith.mulf %4, %6 : vector<4x256xf32>
    %8 = vector.shape_cast %7 : vector<4x256xf32> to vector<1x4x256xf32>
    %cst = arith.constant dense<0.000000e+00> : vector<1xf32>
    %9 = vector.multi_reduction <add>, %8, %cst [1, 2] : vector<1x4x256xf32> to vector<1xf32>
    %10 = vector.shape_cast %9 : vector<1xf32> to vector<1x1x1xf32>
    %11 = vector.extract %10[0, 0, 0] : f32 from vector<1x1x1xf32>
    %c16_i32 = arith.constant 16 : i32
    %12 = tpu.dynamic_rotate %1 by %c16_i32 dim 1 : vector<4x256xf32>, i32 -> vector<4x256xf32>
    %13 = arith.subf %1, %12 : vector<4x256xf32>
    %14 = tpu.iota {dimensions = array<i32: 1>} : vector<1x256xi32>
    %c16_i32_4 = arith.constant 16 : i32
    %15 = vector.broadcast %c16_i32_4 : i32 to vector<1x256xi32>
    %16 = arith.cmpi sge, %14, %15 : vector<1x256xi32>
    %17 = arith.mulf %13, %13 : vector<4x256xf32>
    %cst_5 = arith.constant 0.000000e+00 : f32
    %18 = vector.shape_cast %16 : vector<1x256xi1> to vector<1x256xi1>
    %19 = vector.broadcast %18 : vector<1x256xi1> to vector<4x256xi1>
    %20 = vector.broadcast %cst_5 : f32 to vector<4x256xf32>
    %21 = arith.select %19, %17, %20 : vector<4x256xi1>, vector<4x256xf32>
    %22 = vector.shape_cast %21 : vector<4x256xf32> to vector<1x4x256xf32>
    %cst_6 = arith.constant dense<0.000000e+00> : vector<1xf32>
    %23 = vector.multi_reduction <add>, %22, %cst_6 [1, 2] : vector<1x4x256xf32> to vector<1xf32>
    %24 = vector.shape_cast %23 : vector<1xf32> to vector<1x1x1xf32>
    %25 = vector.extract %24[0, 0, 0] : f32 from vector<1x1x1xf32>
    %26 = tpu.iota {dimensions = array<i32: 2>} : vector<1x1x2xi32>
    %c0_i32 = arith.constant 0 : i32
    %27 = vector.broadcast %c0_i32 : i32 to vector<1x1x2xi32>
    %28 = arith.cmpi eq, %26, %27 : vector<1x1x2xi32>
    %29 = vector.broadcast %25 : f32 to vector<1x1x2xf32>
    %30 = vector.broadcast %11 : f32 to vector<1x1x2xf32>
    %31 = arith.select %28, %29, %30 : vector<1x1x2xi1>, vector<1x1x2xf32>
    %c0_7 = arith.constant 0 : index
    %c0_8 = arith.constant 0 : index
    %c0_9 = arith.constant 0 : index
    %32 = vector.load %arg3[%c0_7, %c0_8, %c0_9] : memref<1x1x2xf32, #tpu.memory_space<vmem>>, vector<1x1x2xf32>
    tpu.vector_store %arg3[%c0_7, %c0_8, %c0_9], %31 {strides = array<i32>} : memref<1x1x2xf32, #tpu.memory_space<vmem>>, vector<1x1x2xf32>,
    return
  }
  func.func @transform_0(%arg0: i32) -> (i32, i32, i32) {
    %c0_i32 = arith.constant 0 : i32
    %c0_i32_0 = arith.constant 0 : i32
    %c0_i32_1 = arith.constant 0 : i32
    return %arg0, %c0_i32, %c0_i32_0 : i32, i32, i32
  }
  func.func @transform_1(%arg0: i32) -> (i32, i32) {
    %c0_i32 = arith.constant 0 : i32
    %c0_i32_0 = arith.constant 0 : i32
    %c0_i32_1 = arith.constant 0 : i32
    return %c0_i32, %c0_i32_0 : i32, i32
  }
  func.func @transform_2(%arg0: i32) -> (i32, i32, i32) {
    %c0_i32 = arith.constant 0 : i32
    %c0_i32_0 = arith.constant 0 : i32
    %c0_i32_1 = arith.constant 0 : i32
    return %arg0, %c0_i32, %c0_i32_0 : i32, i32, i32
  }
}

</mosaic_0001>

<bundles_post_ra>
// kernel: tpu_custom_call.1
= control target key start
LH: loop header
LB: loop body
LE: loop exit
PB: predicated region body
PF: predicated region fallthrough
CT: control target
= control target key end

     0   :  { %7 = vsyncpa [#allocation3], 0  ;;  %s753_s0 = inlined_call_operand.hbm [shape: f32[2,4,256], index: 0, kind: input, shape index: {}]   ;;  %s754_s1 = inlined_call_operand.hbm [shape: f32[1,256], index: 1, kind: input, shape index: {}]   ;;  %s755_s2 = inlined_call_operand.hbm [shape: f32[2,1,2], index: 2, kind: output, shape index: {}]  }
   0x1   :  { %9 = vsyncpa [#allocation3 + $0x1], 0 }
   0x2   :  { %10 = vsyncpa [#allocation6], 0 }
   0x3   :  { %11 = vsyncpa [#allocation4], 0 }
   0x4   :  { %13 = vsyncpa [#allocation4 + $0x1], 0  ;;  %s574_s9 = smov 0   ;;  %s576_s10 = smov 0  }
   0x5   :  { %s578_s11 = smov 0   ;;  %s580_s12 = smov 0  }
   0x6 LB: > { %s595_s13 = sadd.s32 4294967295, %s552_s12   ;;  %s352_s14 = sadd.s32 4294967294, %s552_s12   ;;  %s552_s12 = sphi %s580_s12, %s778_s12   ;;  %s548_s11 = sphi %s578_s11, %s777_s11   ;;  %s544_s10 = sphi %s576_s10, %s776_s10   ;;  %s540_s9 = sphi %s574_s9, %s775_s9  }
   0x7   : > { %p39_p0 = scmp.ne.s32.totalorder %s544_s10, %s540_s9  ;;  %p756_p1 = scmp.eq.s32.totalorder %s595_s13, 0 }
   0x8   : > { %p90_p3 = scmp.eq.s32.totalorder %s352_s14, 1  ;;  %p353_p5 = scmp.ge.s32.totalorder %s552_s12, 1 }
   0x9   : > { %p604_p4 = por %p756_p1, %p39_p0  ;;  %p97_p7 = scmp.lt.s32.totalorder %s552_s12, 3 }
   0xa   : > { %p609_p6 = por %p90_p3, %p39_p0  ;;  %s554_s18 = smov [#allocation5]  }
   0xb   : > { %s760_s15 = scalar_select %p604_p4, 1, 0 }
   0xc   : > { %s761_s16 = scalar_select %p609_p6, 1, 0 }
   0xd   : > { %p614_p8 = pnand %p353_p5, %p97_p7  ;;  %s110_s19 = sshll.u32 %s554_s18, 4  ;;  %s111_s19 = int_to_ptr.vmem [resolvable:$true] %s110_s19 }
   0xe   : > { %s622_s20 = sadd.s32 1, %s552_s12   ;;  %s26_s24 = sadd.s32 1, %s548_s11 }
   0xf   : > { %s762_s17 = scalar_select %p614_p8, 1, 0 }
  0x10   : > { %p378_p10 = pneg %p614_p8  ;;  %s23_s22 = ssub.s32 %s552_s12, %s622_s20 }
  0x11   : > { %p632_p12 = scmp.eq.s32.totalorder %s23_s22, 0  ;;  %p33_p13 = scmp.ne.s32.totalorder %s548_s11, %s544_s10 }
  0x12   : > { %p626_p11 = pnand %p378_p10, %p756_p1  ;;  %s441_s25 = scalar_lea.vmem %s111_s19, 32 }
  0x13   : > { %p442_p3 = scmp.ne.s32.totalorder %s111_s19, %s441_s25  ;;  %p449_p9 = scmp.lt.s32.totalorder %s111_s19, %s111_s19 }
  0x14   : > { %p432_p0 = pneg %p626_p11  ;;  %p450_p2 = scmp.lt.s32.totalorder %s441_s25, %s441_s25 }
  0x16   : > { %p444_p5 = pnand %p442_p3, %p432_p0  ;;  %p451_p10 = por %p450_p2, %p449_p9 }
  0x18   : > { %p445_p7 = pneg %p444_p5 }
  0x1a   : > { %p452_p1 = pnand %p451_p10, %p445_p7 }
  0x1c   : > { %455 = shalt.err (!%p452_p1)
}
  0x1d   : > { %381 = dma.hbm_to_vmem [thread:$0]  (!%p626_p11), %s754_s1, 32, %s111_s19, [#allocation6]  }
  0x1e   : > { %s649_s28 = scalar_select %p632_p12, %s548_s11, %s26_s24  }
  0x1f   : > { %p34_p1 = scmp.eq.s32.totalorder %s552_s12, 0  ;;  %p765_p2 = scmp.eq.s32.totalorder %s595_s13, 1 }
  0x20   : > { %p391_p0 = scmp.lt.s32.totalorder %s552_s12, 2  ;;  %s121_s30 = sand.u32 1, %s548_s11  }
  0x21   : > { %p657_p9 = por %p765_p2, %p33_p13  ;;  %p35_p3 = por %p34_p1, %p33_p13 }
  0x22   : > { %s356_s3 = sshll.u32 %s121_s30, 3  ;;  %s365_s4 = sshll.u32 %s552_s12, 7 }
  0x23   : > { %s766_s29 = scalar_select %p657_p9, 1, 0 }
  0x24   : > { %s670_s7 = scalar_lea.hbm %s753_s0, %s365_s4  ;;  %s125_s8 = scalar_lea.vmem [#allocation2], %s356_s3 }
  0x25   : > { %s133_s14 = sshll.u32 %s125_s8, 4  ;;  %p672_p11 = pnand %p391_p0, %p35_p3  ;;  %s134_s14 = int_to_ptr.vmem [resolvable:$true] %s133_s14 }
  0x26   : > { %s122_s19 = scalar_lea.sflag [#allocation3], %s121_s30  ;;  %s456_s21 = scalar_lea.hbm %s670_s7, 128 }
  0x27   : > { %p457_p12 = scmp.ne.s32.totalorder %s670_s7, %s456_s21  ;;  %p458_p13 = pneg %p672_p11 }
  0x28   : > { %s461_s24 = scalar_lea.hbm %s753_s0, 256  ;;  %p462_p10 = scmp.lt.s32.totalorder %s670_s7, %s753_s0 }
  0x29   : > { %p459_p5 = pnand %p458_p13, %p457_p12  ;;  %p463_p1 = scmp.lt.s32.totalorder %s461_s24, %s456_s21 }
  0x2b   : > { %p460_p7 = pneg %p459_p5  ;;  %p464_p2 = por %p463_p1, %p462_p10 }
  0x2d   : > { %p465_p0 = pnand %p464_p2, %p460_p7 }
  0x2f   : > { %468 = shalt.err (!%p465_p0)
}
  0x30   : > { %s469_s27 = scalar_lea.vmem %s134_s14, 128  ;;  %s555_s30 = smov [#allocation2]  }
  0x31   : > { %p470_p3 = scmp.ne.s32.totalorder %s134_s14, %s469_s27  ;;  %s474_s3 = sshll.u32 %s555_s30, 4  ;;  %s475_s3 = int_to_ptr.vmem [resolvable:$false] %s474_s3 }
  0x32   : > { %s476_s4 = scalar_lea.vmem %s475_s3, 256  ;;  %p477_p12 = scmp.lt.s32.totalorder %s134_s14, %s475_s3 }
  0x33   : > { %p472_p6 = pnand %p470_p3, %p458_p13  ;;  %p478_p5 = scmp.lt.s32.totalorder %s476_s4, %s469_s27 }
  0x35   : > { %p473_p9 = pneg %p472_p6  ;;  %p479_p4 = por %p478_p5, %p477_p12 }
  0x37   : > { %p480_p8 = pnand %p479_p4, %p473_p9 }
  0x39   : > { %483 = shalt.err (!%p480_p8)
}
  0x3a   : > { %385 = dma.hbm_to_vmem [thread:$0]  (!%p672_p11), %s670_s7, 128, %s134_s14, %s122_s19  }
  0x3b   : > { %p768_p7 = scmp.ne.s32.totalorder %s762_s17, 0 }
  0x3c   : > { %s693_s5 = sand.u32 (!%p768_p7), 1, %s544_s10   ;;  %p769_p6 = scmp.ne.s32.totalorder (!%p768_p7), %s760_s15, 0 }
  0x3d   : > { %142 = sbr.rel (%p768_p7) target bundleno = 420 (0x1a4), region = 28  ;;  %s360_s6 = sshll.u32 (!%p768_p7), %s693_s5, 3 }
  0x3e   : > { %s145_s8 = scalar_lea.sflag (!%p768_p7), [#allocation3], %s693_s5  ;;  %s148_s21 = scalar_lea.vmem (!%p768_p7), [#allocation2], %s360_s6 }
  0x42   : > { %527 = dma.done.wait (%p769_p6), %s145_s8, 128  }
  0x43   : > { %529 = vsyncadd (%p769_p6), %s145_s8, 4294967168  ;;  %p770_p4 = scmp.eq.s32.totalorder %s595_s13, 0 }
  0x45   : > { %531 = dma.done.wait (%p770_p4), [#allocation6], 32   ;;  %p771_p8 = pmov %p770_p4 }
  0x46   : > { %v172_v0 = vld [vmem:[%s148_s21] sm:$0xff]  ;;  %s556_s17 = smov 16   ;;  %s557_s7 = smov 1   ;;  %v180_v2 = vlaneseq  ;;  %v191_v9 = vld [vmem:[#allocation5] sm:$0x3]  ;;  %vm207_vm3 = vcmask 1043456  }
  0x47   : > { %533 = vsyncadd (%p771_p8), [#allocation6], 4294967264  ;;  %220 = vrot.lane.b32.xlu1 %v172_v0, %s556_s17  ;;  %176 = vrot.lane.b32.xlu0 %v172_v0, %s557_s7  ;;  %v174_v1 = vcombine.high %v172_v0, %v172_v0  ;;  %s362_s15 = sshll.u32 %s595_s13, 4  ;;  %s171_s14 = scalar_lea.vmem [#allocation7], %s693_s5  ;;  %vm261_vm5 = vcmask 8192  }
  0x48   : > { %v194_v3 = vshrl.u32 %v180_v2, 7  ;;  %v705_v4 = vand.u32 127, %v180_v2  ;;  %s276_s18 = sshll.u32 %s171_s14, 4  ;;  %s716_s25 = scalar_lea.hbm %s755_s2, %s362_s15  ;;  %s277_s18 = int_to_ptr.vmem [resolvable:$true] %s276_s18 }
  0x49   : > { %s264_s26 = scalar_lea.sflag [#allocation4], %s693_s5  ;;  %s484_s13 = scalar_lea.vmem %s277_s18, 16 }
  0x4a   : > { %v195_v7 = vsub.s32 0, %v194_v3  ;;  %v199_v8 = vsub.s32 1, %v194_v3  ;;  %vm224_vm0 = vcmp.lt.s32.totalorder %v705_v4, 16  ;;  %vm182_vm1 = vcmp.lt.s32.totalorder %v705_v4, 1  ;;  %p485_p9 = scmp.ne.s32.totalorder %s277_s18, %s484_s13  ;;  %p772_p11 = scmp.ne.s32.totalorder %s766_s29, 0 }
  0x4b   : > { %222 = vrot.lane.b32.xlu1 %v174_v1, %s556_s17  ;;  %178 = vrot.lane.b32.xlu0 %v174_v1, %s557_s7  ;;  %vm233_vm2 = vcmp.ge.s32.totalorder %v705_v4, 16  ;;  %vm257_vm4 = vcmp.eq.s32.totalorder %v705_v4, 0  ;;  %s558_s27 = smov [#allocation7]  }
  0x4c   : > { %v196_v12 = vrot.slane %v191_v9, %v195_v7  ;;  %v200_v13 = vrot.slane %v191_v9, %v199_v8  ;;  %p486_p13 = pnand %p485_p9, %p772_p11  ;;  %s488_s30 = sshll.u32 %s558_s27, 4  ;;  %s489_s30 = int_to_ptr.vmem [resolvable:$false] %s488_s30 }
  0x4d   : > { %s490_s3 = scalar_lea.vmem %s489_s30, 32  ;;  %p491_p1 = scmp.lt.s32.totalorder %s277_s18, %s489_s30 }
  0x4e   : > { %v201_v22 = vcombine.low %v196_v12, %v200_v13  ;;  %p487_p10 = pneg %p486_p13  ;;  %p492_p2 = scmp.lt.s32.totalorder %s490_s3, %s484_s13 }
  0x50   : > { %p493_p0 = por %p492_p2, %p491_p1 }
  0x52   : > { %p494_p3 = pnand %p493_p0, %p487_p10 }
  0xb9   : > { %v221_v5 = vpop.permute.xlu1 %220  ;;  %v177_v6 = vpop.permute.xlu0 %176 }
  0xbd   : > { %v223_v10 = vpop.permute.xlu1 %222  ;;  %v179_v11 = vpop.permute.xlu0 %178 }
  0xbe   : > { %v225_v14 = vsel %vm224_vm0, %v221_v5, %v223_v10  ;;  %v226_v15 = vsel %vm224_vm0, %v223_v10, %v221_v5  ;;  %v183_v16 = vsel %vm182_vm1, %v177_v6, %v179_v11  ;;  %v184_v17 = vsel %vm182_vm1, %v179_v11, %v177_v6 }
  0xbf   : > { %v229_v18 = vcombine.low %v226_v15, %v225_v14  ;;  %v187_v19 = vcombine.low %v184_v17, %v183_v16 }
  0xc1   : > { %v231_v20 = vsub.f32 %v172_v0, %v229_v18  ;;  %v189_v21 = vsub.f32 %v172_v0, %v187_v19 }
  0xc3   : > { %v235_v23 = vmul.f32 %v231_v20, %v231_v20  ;;  %v190_v24 = vmul.f32 %v189_v21, %v189_v21 }
  0xc5   : > { %v241_v25 = vcombine.high %v235_v23, %v235_v23  ;;  %v243_v26 = vsel %vm233_vm2, %v235_v23, 0.0  ;;  %v203_v27 = vmul.f32 %v201_v22, %v190_v24 }
  0xc6   : > { %v245_v28 = vsel %vm207_vm3, %v243_v26, 0.0 }
  0xc7   : > { %v246_v29 = vsel %vm207_vm3, %v241_v25, 0.0  ;;  %v205_v30 = vcombine.high %v203_v27, %v203_v27  ;;  %v208_v32 = vsel %vm207_vm3, %v203_v27, 0.0 }
  0xc8   : > { %v247_v31 = vadd.f32 %v246_v29, %v245_v28 }
  0xc9   : > { %v209_v33 = vsel %vm207_vm3, %v205_v30, 0.0 }
  0xca   : > { %248 = vadd.xlane.f32.xlu1 %v247_v31  ;;  %v210_v34 = vadd.f32 %v209_v33, %v208_v32 }
  0xcc   : > { %211 = vadd.xlane.f32.xlu0 %v210_v34 }
 0x153   : > { %v249_v35 = vpop.xlane.xlu1 %248 }
 0x154   : > { %v250_v36 = vrot.slane %v249_v35, 4 }
 0x155   : > { %v212_v37 = vpop.xlane.xlu0 %211 }
 0x156   : > { %v251_v38 = vadd.f32 %v250_v36, %v249_v35  ;;  %v213_v39 = vrot.slane %v212_v37, 4 }
 0x158   : > { %v252_v40 = vrot.slane %v251_v38, 2  ;;  %v214_v41 = vadd.f32 %v213_v39, %v212_v37 }
 0x15a   : > { %v253_v42 = vadd.f32 %v252_v40, %v251_v38  ;;  %v215_v43 = vrot.slane %v214_v41, 2 }
 0x15c   : > { %v216_v44 = vadd.f32 %v215_v43, %v214_v41  ;;  %v254_v45 = vrot.slane %v253_v42, 1 }
 0x15e   : > { %v217_v46 = vrot.slane %v216_v44, 1  ;;  %v255_v48 = vadd.f32 %v254_v45, %v253_v42 }
 0x160   : > { %v218_v47 = vadd.f32 %v217_v46, %v216_v44 }
 0x162   : > { %366 = vpush %v218_v47 }
 0x163   : > { %368 = vpush %v255_v48 }
 0x193   : > { %s367_s19 = spop %366 }
 0x194   : > { %v259_v49 = vstv %s367_s19  ;;  %s369_s22 = spop %368 }
 0x195   : > { %v258_v50 = vstv %s369_s22 }
 0x196   : > { %v260_v51 = vsel %vm257_vm4, %v258_v50, %v259_v49 }
 0x197   : > { %262 = vst.msk [vmem:[%s171_s14] sm:$0x1] %vm261_vm5, %v260_v51 }
 0x198   : > { %497 = shalt.err (!%p494_p3)
}
 0x199   : > { %s498_s4 = scalar_lea.hbm %s716_s25, 16  ;;  %s502_s8 = scalar_lea.hbm %s755_s2, 32 }
 0x19a   : > { %p499_p12 = scmp.ne.s32.totalorder %s716_s25, %s498_s4  ;;  %p503_p6 = scmp.lt.s32.totalorder %s716_s25, %s755_s2 }
 0x19b   : > { %p504_p4 = scmp.lt.s32.totalorder %s502_s8, %s498_s4 }
 0x19c   : > { %p500_p5 = pnand %p499_p12, %p772_p11 }
 0x19d   : > { %p505_p8 = por %p504_p4, %p503_p6 }
 0x19e   : > { %p501_p7 = pneg %p500_p5 }
 0x1a0   : > { %p506_p9 = pnand %p505_p8, %p501_p7 }
 0x1a2   : > { %509 = shalt.err (!%p506_p9)
}
 0x1a3   : > { %376 = dma.vmem_to_hbm [thread:$0]  (%p772_p11), %s277_s18, 16, %s716_s25, %s264_s26  }
 0x1a4 PF: > { %s288_s7 = sand.u32 1, %s540_s9   ;;  %p773_p13 = scmp.ne.s32.totalorder %s761_s16, 0 }
 0x1a5   : > { %p774_p10 = scmp.ge.s32.totalorder %s552_s12, 2  ;;  %s289_s15 = scalar_lea.sflag [#allocation4], %s288_s7 }
 0x1a7   : > { %p387_p1 = pnand %p774_p10, %p773_p13 }
 0x1a9   : > { %p388_p2 = pneg %p387_p1 }
 0x1ab   : > { %535 = dma.done.wait (%p388_p2), %s289_s15, 16  }
 0x1ac   : > { %537 = vsyncadd (%p388_p2), %s289_s15, 4294967280  ;;  %p16_p0 = scmp.ge.s32.totalorder %s622_s20, 4   ;;  %s775_s9 = smov %s544_s10 }
 0x1ad   : > { %s776_s10 = smov %s548_s11  ;;  %s777_s11 = smov %s649_s28 }
 0x1ae   : > { %s778_s12 = smov %s622_s20  ;;  %18 = sbr.rel (!%p16_p0) target bundleno = 6 (0x6), region = 77 }
 0x1b3   :  { %293 = vsyncpa [#allocation3], 1 }
 0x1b4   :  { %295 = vsyncpa [#allocation3 + $0x1], 1 }
 0x1b5   :  { %296 = vsyncpa [#allocation6], 1 }
 0x1b6   :  { %297 = vsyncpa [#allocation4], 1 }
 0x1b7   :  { %299 = vsyncpa [#allocation4 + $0x1], 1 }

</bundles_post_ra>
